<compile_context>
chip_gen: v6e
topology: v6e:2x2x1
jax: 0.10.0
libtpu: 0.0.40
codegen_flags: <defaults>
</compile_context>

<pallas_src>
import jax
import jax.numpy as jnp
from jax.experimental import pallas as pl
from jax.experimental.pallas import tpu as pltpu

_TARGET_BLOCK_BYTES = 4 * 1024 * 1024  # per-array VMEM block target (~4 MiB)


def _identity_kernel(x_ref, o_ref):
    # Pure passthrough of the current VMEM tile.
    o_ref[...] = x_ref[...]


def identity_map(x: jnp.ndarray) -> jnp.ndarray:
    """Pallas implementation of IdentityMap.forward(x) -> x.

    NOTE: identity needs no compute; in production simply `return x`.
    The Pallas path below runs the passthrough on-TPU as a lane-dense,
    large-tile, alias-to-input HBM copy.
    """
    total = x.size
    if total == 0:
        return x

    # Widest lane-dense column count (multiple of 128) dividing the total
    # element count.  Flattening collapses B and S, so realistic VILA shapes
    # (e.g. S=576, D=1024/4096) always hit this path.
    cols = 0
    for c in (4096, 2048, 1024, 512, 256, 128):
        if total % c == 0:
            cols = c
            break
    if cols == 0:
        # Not lane-divisible: a copy kernel would be pure overhead (masked
        # partial stores) for an op that is semantically free.
        # TODO(synk): could pad + copy, but returning x is strictly better.
        return x

    rows = total // cols
    x2 = x.reshape(rows, cols)

    # Dtype-native sublane multiple: f32 -> 8, bf16 -> 16, int8/fp8 -> 32.
    itemsize = jnp.dtype(x.dtype).itemsize
    sub = 8 * max(1, 4 // max(1, itemsize))

    row_bytes = cols * itemsize
    if rows < sub:
        tr = rows  # full-extent block (exempt from the (8,128) rule)
    else:
        tr = min(rows, max(sub, _TARGET_BLOCK_BYTES // row_bytes))
        tr = max(sub, (tr // sub) * sub)  # multiple of native sublane packing

    grid = (pl.cdiv(rows, tr),)
    spec = pl.BlockSpec((tr, cols), lambda i: (i, 0))

    out = pl.pallas_call(
        _identity_kernel,
        out_shape=jax.ShapeDtypeStruct((rows, cols), x.dtype),
        grid=grid,
        in_specs=[spec],
        out_specs=spec,
        # Output aliases the input HBM buffer: no separate output allocation,
        # and XLA may elide the copy entirely when the producer buffer is
        # reusable.
        input_output_aliases={0: 0},
        compiler_params=pltpu.CompilerParams(
            # Single parallel axis: shards across v7x's 2 TensorCores; no-op
            # on v5e/v6e (1 TC).
            dimension_semantics=("parallel",),
            # 2 arrays x 2 double-buffers x ~4 MiB blocks ~= 16 MiB.
            vmem_limit_bytes=32 * 1024 * 1024,
        ),
    )(x2)
    return out.reshape(x.shape)


# The module's `config` property (metadata only, no compute).
IDENTITY_MAP_CONFIG = {"mm_projector_type": "identity"}


if __name__ == "__main__":
    key = jax.random.PRNGKey(0)

    # Small mm_projector-like input: batch=2, seq=8, hidden=32.
    x_small = jax.random.normal(key, (2, 8, 32), dtype=jnp.float32)
    y_small = identity_map(x_small)
    jax.block_until_ready(y_small)
    assert y_small.shape == x_small.shape and y_small.dtype == x_small.dtype
    assert bool(jnp.array_equal(y_small, x_small))

    # VILA-like shape (S=576 is NOT a multiple of 128): exercises the
    # flattened lane-dense path with multiple grid steps and a ragged last
    # row tile, in bf16 (16-row sublane packing).
    x_big = jax.random.normal(key, (4, 576, 1024), dtype=jnp.bfloat16)
    y_big = identity_map(x_big)
    jax.block_until_ready(y_big)
    assert y_big.shape == x_big.shape and y_big.dtype == x_big.dtype
    assert bool(jnp.array_equal(y_big, x_big))

    assert IDENTITY_MAP_CONFIG["mm_projector_type"] == "identity"
    print("KERNEL_OK")
</pallas_src>

<mosaic_0001>
module attributes {stable_mosaic.version = 11 : i64} {
  func.func @_identity_kernel(%arg0: i32, %arg1: memref<1x512xf32, #tpu.memory_space<vmem>>, %arg2: memref<1x512xf32, #tpu.memory_space<vmem>>) attributes {dimension_semantics = [#tpu.dimension_semantics<parallel>], iteration_bounds = array<i64: 1>, scalar_prefetch = 0 : i64, scratch_operands = 0 : i64, tpu.core_type = #tpu.core_type<tc>, window_params = [{transform_indices = @transform_0, window_bounds = array<i64: 1, 512>}, {transform_indices = @transform_1, window_bounds = array<i64: 1, 512>}]} {
    %c0 = arith.constant 0 : index
    %c0_0 = arith.constant 0 : index
    %0 = vector.load %arg1[%c0, %c0_0] : memref<1x512xf32, #tpu.memory_space<vmem>>, vector<1x512xf32>
    %c0_1 = arith.constant 0 : index
    %c0_2 = arith.constant 0 : index
    %1 = vector.load %arg2[%c0_1, %c0_2] : memref<1x512xf32, #tpu.memory_space<vmem>>, vector<1x512xf32>
    tpu.vector_store %arg2[%c0_1, %c0_2], %0 {strides = array<i32>} : memref<1x512xf32, #tpu.memory_space<vmem>>, vector<1x512xf32>,
    return
  }
  func.func @transform_0(%arg0: i32) -> (i32, i32) {
    %c0_i32 = arith.constant 0 : i32
    %c0_i32_0 = arith.constant 0 : i32
    return %arg0, %c0_i32 : i32, i32
  }
  func.func @transform_1(%arg0: i32) -> (i32, i32) {
    %c0_i32 = arith.constant 0 : i32
    %c0_i32_0 = arith.constant 0 : i32
    return %arg0, %c0_i32 : i32, i32
  }
}

</mosaic_0001>

<bundles_post_ra>
// kernel: tpu_custom_call.1
= control target key start
LH: loop header
LB: loop body
LE: loop exit
PB: predicated region body
PF: predicated region fallthrough
CT: control target
= control target key end

     0   :  { %6 = vsyncpa [#allocation3], 0  ;;  %s106_s0 = inlined_call_operand.hbm [shape: f32[1,512], index: 0, kind: input, shape index: {}, may-alias: {0,1}]   ;;  %s107_s1 = inlined_call_operand.hbm [shape: f32[1,512], index: 1, kind: output, shape index: {}, may-alias: {0,1}]  }
   0x1   :  { %7 = vsyncpa [#allocation4], 0  ;;  %s88_s6 = smov [#allocation2]  }
   0x2   :  { %s14_s7 = sshll.u32 %s88_s6, 4  ;;  %s15_s7 = int_to_ptr.vmem [resolvable:$true] %s14_s7 }
   0x3   :  { %s52_s8 = scalar_lea.vmem %s15_s7, 64  ;;  %p57_p1 = scmp.lt.s32.totalorder %s15_s7, %s15_s7 }
   0x4   :  { %p53_p0 = scmp.ne.s32.totalorder %s15_s7, %s52_s8  ;;  %p58_p2 = scmp.lt.s32.totalorder %s52_s8, %s52_s8 }
   0x6   :  { %p59_p3 = por %p58_p2, %p57_p1 }
   0x8   :  { %p60_p4 = pnand %p59_p3, %p53_p0 }
   0xa   :  { %63 = shalt.err (!%p60_p4)
}
   0xb   :  { %17 = dma.hbm_to_vmem [thread:$0]  %s106_s0, 64, %s15_s7, [#allocation3]  }
   0xc   :  { %84 = dma.done.wait [#allocation3], 64  }
   0xd   :  { %85 = vsyncadd [#allocation3], 4294967232  ;;  %v22_v0 = vlaneseq  ;;  %s89_s11 = smov [#allocation5]   ;;  %v21_v1 = vld [vmem:[#allocation2] sm:$0xf] }
   0xe   :  { %s33_s12 = sshll.u32 %s89_s11, 4  ;;  %s34_s12 = int_to_ptr.vmem [resolvable:$true] %s33_s12 }
   0xf   :  { %vm24_vm0 = vcmp.lt.s32.totalorder %v22_v0, 512  ;;  %s64_s13 = scalar_lea.vmem %s34_s12, 64  ;;  %p69_p6 = scmp.lt.s32.totalorder %s34_s12, %s34_s12 }
  0x10   :  { %26 = vst.msk [vmem:[#allocation5] sm:$0xf] %vm24_vm0, %v21_v1  ;;  %p65_p5 = scmp.ne.s32.totalorder %s34_s12, %s64_s13  ;;  %p70_p7 = scmp.lt.s32.totalorder %s64_s13, %s64_s13 }
  0x12   :  { %p71_p8 = por %p70_p7, %p69_p6 }
  0x14   :  { %p72_p9 = pnand %p71_p8, %p65_p5 }
  0x16   :  { %75 = shalt.err (!%p72_p9)
}
  0x17   :  { %36 = dma.vmem_to_hbm [thread:$0]  %s34_s12, 64, %s107_s1, [#allocation4]  }
  0x18   :  { %86 = dma.done.wait [#allocation4], 64  }
  0x19   :  { %87 = vsyncadd [#allocation4], 4294967232 }
  0x1a   :  { %40 = vsyncpa [#allocation3], 1 }
  0x1b   :  { %41 = vsyncpa [#allocation4], 1 }

</bundles_post_ra>
